<compile_context>
chip_gen: v6e
topology: v6e:2x2x1
jax: 0.10.0
libtpu: 0.0.40
codegen_flags: <defaults>
</compile_context>

<pallas_src>
import math
import jax
import jax.numpy as jnp
from jax import lax
from jax.experimental import pallas as pl
from jax.experimental.pallas import tpu as pltpu


_CONTRACT_LAST = (((1,), (1,)), ((), ()))   # contract last dim of both operands


def _vmem_estimate_bytes(Bb, T, C, ghd, out_itemsize):
    """Rough per-step VMEM footprint (double-buffered blocks + scratch + temps)."""
    bf, f4 = 2, 4
    x_blk = Bb * T * C * bf
    w_blk = (3 * ghd * C + ghd * C) * bf
    b_blk = (3 * ghd + C) * f4
    o_blk = Bb * T * C * out_itemsize
    acc = Bb * T * C * f4
    interm = (T * 3 * ghd + 3 * T * T + 2 * T * ghd) * f4
    return 2 * (x_blk + w_blk + b_blk + o_blk) + acc + interm


def _make_attn_kernel(T, C, n_head, g, Bb):
    hd = C // n_head
    ghd = g * hd
    scale = 1.0 / math.sqrt(hd)
    bf16 = jnp.bfloat16

    def kernel(x_ref, wqkv_ref, bqkv_ref, wp_ref, bp_ref, o_ref, acc_ref):
        gi = pl.program_id(1)
        n_groups = pl.num_programs(1)

        # Init the resident f32 accumulator with the output-projection bias.
        @pl.when(gi == 0)
        def _init():
            acc_ref[...] = jnp.broadcast_to(bp_ref[...][None], (Bb, T, C))

        # Additive causal mask from iotas (no (T,T) input buffer / HBM stream).
        row = lax.broadcasted_iota(jnp.int32, (T, T), 0)
        col = lax.broadcasted_iota(jnp.int32, (T, T), 1)
        neg_mask = jnp.where(row >= col, 0.0, -1e30).astype(jnp.float32)

        wqkv = wqkv_ref[0]        # (3*ghd, C)  bf16
        bqkv = bqkv_ref[0]        # (1, 3*ghd)  f32
        wp = wp_ref[0]            # (ghd, C)    bf16

        # Static batch block: per-group weights stay VMEM-resident across it.
        for bi in range(Bb):
            x = x_ref[bi]                                           # (T, C) bf16

            # Fused Q/K/V projection for g heads: (T,C) x (3*ghd,C) -> (T,3*ghd)
            qkv = lax.dot_general(x, wqkv, _CONTRACT_LAST,
                                  preferred_element_type=jnp.float32) + bqkv

            y_parts = []
            for i in range(g):
                q = qkv[:, i * hd:(i + 1) * hd]
                k = qkv[:, ghd + i * hd: ghd + (i + 1) * hd]
                v = qkv[:, 2 * ghd + i * hd: 2 * ghd + (i + 1) * hd]

                # Scores: contract head_dim (last dim of both) — no transposes.
                att = lax.dot_general(q.astype(bf16), k.astype(bf16),
                                      _CONTRACT_LAST,
                                      preferred_element_type=jnp.float32) * scale
                att = att + neg_mask

                # Numerically stable softmax in f32; divide rides the EUP.
                att_max = jnp.max(att, axis=-1, keepdims=True)
                p = jnp.exp(att - att_max)
                denom = jnp.sum(p, axis=-1, keepdims=True)
                p = p * pl.reciprocal(denom, approx=True)

                # (T, T) @ (T, hd) -> (T, hd)
                y = jnp.dot(p.astype(bf16), v.astype(bf16),
                            preferred_element_type=jnp.float32)
                y_parts.append(y.astype(bf16))

            # Output-projection contribution of these g heads in ONE matmul:
            # (T, g*hd) @ (g*hd, C) -> (T, C), full(er) systolic depth.
            y_group = jnp.concatenate(y_parts, axis=-1)
            contrib = jnp.dot(y_group, wp, preferred_element_type=jnp.float32)
            acc_ref[bi] = acc_ref[bi] + contrib

        @pl.when(gi == n_groups - 1)
        def _write():
            o_ref[...] = acc_ref[...].astype(o_ref.dtype)

    return kernel


def causal_self_attention(x, w_attn, b_attn, w_proj, b_proj, n_head,
                          group_heads=None, batch_block=None):
    """x: (B, T, C).  Weights in PyTorch Linear layout: W (out, in), y = x @ W.T + b."""
    B, T, C = x.shape
    assert C % n_head == 0
    hd = C // n_head

    # Heads per grid step: largest divisor of n_head with g*hd <= 256 (MXU width).
    if group_heads is None:
        group_heads = 1
        for cand in range(n_head, 0, -1):
            if n_head % cand == 0 and cand * hd <= 256:
                group_heads = cand
                break
    g = group_heads
    assert n_head % g == 0
    ghd = g * hd
    n_groups = n_head // g

    # Batch rows per grid step: amortize weight DMA over batch within VMEM budget.
    if batch_block is None:
        batch_block = 1
        for cand in range(B, 0, -1):
            if (B % cand == 0 and
                    _vmem_estimate_bytes(cand, T, C, ghd, x.dtype.itemsize)
                    <= 40 * 1024 * 1024):
                batch_block = cand
                break
    Bb = batch_block
    assert B % Bb == 0

    bf16 = jnp.bfloat16

    # ---- one-time layout prep (all casts / transposes / reshapes live here) ----
    x_bf = x.astype(bf16)
    wq = w_attn[0 * C:1 * C].reshape(n_groups, ghd, C)
    wk = w_attn[1 * C:2 * C].reshape(n_groups, ghd, C)
    wv = w_attn[2 * C:3 * C].reshape(n_groups, ghd, C)
    w_qkv = jnp.concatenate([wq, wk, wv], axis=1).astype(bf16)     # (n_groups, 3*ghd, C)
    b_qkv = jnp.concatenate(
        [b_attn[0 * C:1 * C].reshape(n_groups, 1, ghd),
         b_attn[1 * C:2 * C].reshape(n_groups, 1, ghd),
         b_attn[2 * C:3 * C].reshape(n_groups, 1, ghd)],
        axis=2).astype(jnp.float32)                                # (n_groups, 1, 3*ghd)
    # w_proj is (C_out, C_in); pre-transpose ONCE so each group slice is (g*hd, C_out).
    w_p = w_proj.T.reshape(n_groups, ghd, C).astype(bf16)
    b_p = b_proj.reshape(1, C).astype(jnp.float32)

    kernel = _make_attn_kernel(T, C, n_head, g, Bb)

    vmem_limit = int(min(max(1.5 * _vmem_estimate_bytes(Bb, T, C, ghd,
                                                        x.dtype.itemsize),
                             32 * 1024 * 1024),
                         64 * 1024 * 1024))

    return pl.pallas_call(
        kernel,
        out_shape=jax.ShapeDtypeStruct((B, T, C), x.dtype),
        grid_spec=pltpu.PrefetchScalarGridSpec(
            num_scalar_prefetch=0,
            grid=(B // Bb, n_groups),
            in_specs=[
                pl.BlockSpec((Bb, T, C), lambda b, gi: (b, 0, 0)),        # x (bf16)
                pl.BlockSpec((1, 3 * ghd, C), lambda b, gi: (gi, 0, 0)),  # W_qkv[group]
                pl.BlockSpec((1, 1, 3 * ghd), lambda b, gi: (gi, 0, 0)),  # b_qkv[group]
                pl.BlockSpec((1, ghd, C), lambda b, gi: (gi, 0, 0)),      # W_proj[group]
                pl.BlockSpec((1, C), lambda b, gi: (0, 0)),               # b_proj
            ],
            out_specs=pl.BlockSpec((Bb, T, C), lambda b, gi: (b, 0, 0)),
            scratch_shapes=[pltpu.VMEM((Bb, T, C), jnp.float32)],
        ),
        compiler_params=pltpu.CompilerParams(
            dimension_semantics=("parallel", "arbitrary"),
            vmem_limit_bytes=vmem_limit),
    )(x_bf, w_qkv, b_qkv, w_p, b_p)


def reference(x, w_attn, b_attn, w_proj, b_proj, n_head):
    """Pure-JAX f32 reference mirroring the PyTorch forward."""
    B, T, C = x.shape
    hd = C // n_head
    qkv = jnp.einsum('btc,oc->bto', x, w_attn) + b_attn
    q, k, v = jnp.split(qkv, 3, axis=2)
    q = q.reshape(B, T, n_head, hd).transpose(0, 2, 1, 3)
    k = k.reshape(B, T, n_head, hd).transpose(0, 2, 1, 3)
    v = v.reshape(B, T, n_head, hd).transpose(0, 2, 1, 3)
    att = jnp.einsum('bhqd,bhkd->bhqk', q, k) * (1.0 / math.sqrt(hd))
    mask = jnp.tril(jnp.ones((T, T), dtype=bool))
    att = jnp.where(mask[None, None], att, -jnp.inf)
    att = jax.nn.softmax(att, axis=-1)
    y = jnp.einsum('bhqk,bhkd->bhqd', att, v)
    y = y.transpose(0, 2, 1, 3).reshape(B, T, C)
    return jnp.einsum('btc,oc->bto', y, w_proj) + b_proj


if __name__ == "__main__":
    # config: n_embd=32, n_head=4, block_size >= T
    B, T, C, n_head = 2, 8, 32, 4

    key = jax.random.PRNGKey(0)
    kx, kwa, kba, kwp, kbp = jax.random.split(key, 5)

    x = jax.random.normal(kx, (B, T, C), dtype=jnp.float32)
    # deterministic synthetic params (PyTorch Linear convention: (out, in))
    w_attn = jax.random.normal(kwa, (3 * C, C), dtype=jnp.float32) * 0.02
    b_attn = jax.random.normal(kba, (3 * C,), dtype=jnp.float32) * 0.02
    w_proj = jax.random.normal(kwp, (C, C), dtype=jnp.float32) * 0.02
    b_proj = jax.random.normal(kbp, (C,), dtype=jnp.float32) * 0.02

    ref = reference(x, w_attn, b_attn, w_proj, b_proj, n_head)

    # Default path: auto group size / batch block (single grid step here).
    out = causal_self_attention(x, w_attn, b_attn, w_proj, b_proj, n_head)
    out = jax.block_until_ready(out)
    assert out.shape == (B, T, C)
    assert jnp.allclose(out, ref, atol=1e-2, rtol=1e-2), "mismatch (default path)"

    # Multi-step path: 2 head groups x 2 batch blocks exercises the resident
    # accumulator / pl.when init+finalize across the reduction axis.
    out2 = causal_self_attention(x, w_attn, b_attn, w_proj, b_proj, n_head,
                                 group_heads=2, batch_block=1)
    out2 = jax.block_until_ready(out2)
    assert jnp.allclose(out2, ref, atol=1e-2, rtol=1e-2), "mismatch (tiled path)"

    print("KERNEL_OK")
</pallas_src>

<mosaic_0001>
module attributes {stable_mosaic.version = 11 : i64} {
  func.func @kernel(%arg0: i32, %arg1: i32, %arg2: memref<2x8x32xbf16, #tpu.memory_space<vmem>>, %arg3: memref<1x96x32xbf16, #tpu.memory_space<vmem>>, %arg4: memref<1x1x96xf32, #tpu.memory_space<vmem>>, %arg5: memref<1x32x32xbf16, #tpu.memory_space<vmem>>, %arg6: memref<1x32xf32, #tpu.memory_space<vmem>>, %arg7: memref<2x8x32xf32, #tpu.memory_space<vmem>>, %arg8: memref<2x8x32xf32, #tpu.memory_space<vmem>>) attributes {dimension_semantics = [#tpu.dimension_semantics<parallel>, #tpu.dimension_semantics<arbitrary>], iteration_bounds = array<i64: 1, 1>, scalar_prefetch = 0 : i64, scratch_operands = 1 : i64, tpu.core_type = #tpu.core_type<tc>, window_params = [{transform_indices = @transform_0, window_bounds = array<i64: 2, 8, 32>}, {transform_indices = @transform_1, window_bounds = array<i64: 1, 96, 32>}, {transform_indices = @transform_2, window_bounds = array<i64: 1, 1, 96>}, {transform_indices = @transform_3, window_bounds = array<i64: 1, 32, 32>}, {pipeline_mode = #tpu.pipeline_mode<synchronous>, transform_indices = @transform_4, window_bounds = array<i64: 1, 32>}, {transform_indices = @transform_5, window_bounds = array<i64: 2, 8, 32>}]} {
    %c0_i32 = arith.constant 0 : i32
    %0 = arith.cmpi eq, %arg1, %c0_i32 : i32
    %1 = arith.extui %0 : i1 to i32
    %c0_i32_0 = arith.constant 0 : i32
    %2 = arith.cmpi ne, %1, %c0_i32_0 : i32
    scf.if %2 {
      %c0_73 = arith.constant 0 : index
      %c0_74 = arith.constant 0 : index
      %228 = vector.load %arg6[%c0_73, %c0_74] : memref<1x32xf32, #tpu.memory_space<vmem>>, vector<1x32xf32>
      %229 = vector.shape_cast %228 : vector<1x32xf32> to vector<1x1x32xf32>
      %230 = vector.shape_cast %229 : vector<1x1x32xf32> to vector<1x1x32xf32>
      %231 = vector.broadcast %230 : vector<1x1x32xf32> to vector<2x8x32xf32>
      %c0_75 = arith.constant 0 : index
      %c0_76 = arith.constant 0 : index
      %c0_77 = arith.constant 0 : index
      %232 = vector.load %arg8[%c0_75, %c0_76, %c0_77] : memref<2x8x32xf32, #tpu.memory_space<vmem>>, vector<2x8x32xf32>
      tpu.vector_store %arg8[%c0_75, %c0_76, %c0_77], %231 {strides = array<i32>} : memref<2x8x32xf32, #tpu.memory_space<vmem>>, vector<2x8x32xf32>,
    } else {
    }
    %3 = tpu.iota {dimensions = array<i32: 0>} : vector<8x8xi32>
    %4 = tpu.iota {dimensions = array<i32: 1>} : vector<8x8xi32>
    %5 = arith.cmpi sge, %3, %4 : vector<8x8xi32>
    %cst = arith.constant 0.000000e+00 : f32
    %cst_1 = arith.constant -1.000000e+30 : f32
    %6 = vector.broadcast %cst : f32 to vector<8x8xf32>
    %7 = vector.broadcast %cst_1 : f32 to vector<8x8xf32>
    %8 = arith.select %5, %6, %7 : vector<8x8xi1>, vector<8x8xf32>
    %c0 = arith.constant 0 : index
    %c0_2 = arith.constant 0 : index
    %c0_3 = arith.constant 0 : index
    %9 = vector.load %arg3[%c0, %c0_2, %c0_3] : memref<1x96x32xbf16, #tpu.memory_space<vmem>>, vector<1x96x32xbf16>
    %10 = vector.shape_cast %9 : vector<1x96x32xbf16> to vector<96x32xbf16>
    %c0_4 = arith.constant 0 : index
    %c0_5 = arith.constant 0 : index
    %c0_6 = arith.constant 0 : index
    %11 = vector.load %arg4[%c0_4, %c0_5, %c0_6] : memref<1x1x96xf32, #tpu.memory_space<vmem>>, vector<1x1x96xf32>
    %12 = vector.shape_cast %11 : vector<1x1x96xf32> to vector<1x96xf32>
    %c0_7 = arith.constant 0 : index
    %c0_8 = arith.constant 0 : index
    %c0_9 = arith.constant 0 : index
    %13 = vector.load %arg5[%c0_7, %c0_8, %c0_9] : memref<1x32x32xbf16, #tpu.memory_space<vmem>>, vector<1x32x32xbf16>
    %14 = vector.shape_cast %13 : vector<1x32x32xbf16> to vector<32x32xbf16>
    %c0_10 = arith.constant 0 : index
    %c0_11 = arith.constant 0 : index
    %c0_12 = arith.constant 0 : index
    %15 = vector.load %arg2[%c0_10, %c0_11, %c0_12] : memref<2x8x32xbf16, #tpu.memory_space<vmem>>, vector<1x8x32xbf16>
    %16 = vector.shape_cast %15 : vector<1x8x32xbf16> to vector<8x32xbf16>
    %cst_13 = arith.constant dense<0.000000e+00> : vector<8x96xf32>
    %17 = tpu.matmul %16, %10, %cst_13 {dimension_numbers = #tpu.dot_dimension_numbers<[1], [1], [0], [0], [0, 0, 1, 0], [], []>} : vector<8x32xbf16>, vector<96x32xbf16>, vector<8x96xf32> -> vector<8x96xf32>
    %18 = vector.broadcast %12 : vector<1x96xf32> to vector<8x96xf32>
    %19 = arith.addf %17, %18 : vector<8x96xf32>
    %20 = vector.extract_strided_slice %19 {offsets = [0, 0], sizes = [8, 8], strides = [1, 1]} : vector<8x96xf32> to vector<8x8xf32>
    %21 = vector.extract_strided_slice %19 {offsets = [0, 32], sizes = [8, 8], strides = [1, 1]} : vector<8x96xf32> to vector<8x8xf32>
    %22 = vector.extract_strided_slice %19 {offsets = [0, 64], sizes = [8, 8], strides = [1, 1]} : vector<8x96xf32> to vector<8x8xf32>
    %23 = arith.truncf %20 : vector<8x8xf32> to vector<8x8xbf16>
    %24 = arith.truncf %21 : vector<8x8xf32> to vector<8x8xbf16>
    %cst_14 = arith.constant dense<0.000000e+00> : vector<8x8xf32>
    %25 = tpu.matmul %23, %24, %cst_14 {dimension_numbers = #tpu.dot_dimension_numbers<[1], [1], [0], [0], [0, 0, 1, 0], [], []>} : vector<8x8xbf16>, vector<8x8xbf16>, vector<8x8xf32> -> vector<8x8xf32>
    %cst_15 = arith.constant 0.353553385 : f32
    %26 = vector.broadcast %cst_15 : f32 to vector<8x8xf32>
    %27 = arith.mulf %25, %26 : vector<8x8xf32>
    %28 = arith.addf %27, %8 : vector<8x8xf32>
    %cst_16 = arith.constant dense<0xFF800000> : vector<8xf32>
    %29 = vector.multi_reduction <maximumf>, %28, %cst_16 [1] : vector<8x8xf32> to vector<8xf32>
    %30 = vector.shape_cast %29 : vector<8xf32> to vector<8x1xf32>
    %31 = vector.broadcast %30 : vector<8x1xf32> to vector<8x8xf32>
    %32 = arith.subf %28, %31 : vector<8x8xf32>
    %33 = math.exp %32 : vector<8x8xf32>
    %cst_17 = arith.constant dense<0.000000e+00> : vector<8xf32>
    %34 = vector.multi_reduction <add>, %33, %cst_17 [1] : vector<8x8xf32> to vector<8xf32>
    %35 = vector.shape_cast %34 : vector<8xf32> to vector<8x1xf32>
    %36 = tpu.reciprocal %35 {approx = true} : vector<8x1xf32> -> vector<8x1xf32>
    %37 = vector.broadcast %36 : vector<8x1xf32> to vector<8x8xf32>
    %38 = arith.mulf %33, %37 : vector<8x8xf32>
    %39 = arith.truncf %38 : vector<8x8xf32> to vector<8x8xbf16>
    %40 = arith.truncf %22 : vector<8x8xf32> to vector<8x8xbf16>
    %cst_18 = arith.constant dense<0.000000e+00> : vector<8x8xf32>
    %41 = tpu.matmul %39, %40, %cst_18 {dimension_numbers = #tpu.dot_dimension_numbers<[1], [0], [0], [1], [0, 0, 1, 1], [], []>} : vector<8x8xbf16>, vector<8x8xbf16>, vector<8x8xf32> -> vector<8x8xf32>
    %42 = arith.truncf %41 : vector<8x8xf32> to vector<8x8xbf16>
    %43 = vector.extract_strided_slice %19 {offsets = [0, 8], sizes = [8, 8], strides = [1, 1]} : vector<8x96xf32> to vector<8x8xf32>
    %44 = vector.extract_strided_slice %19 {offsets = [0, 40], sizes = [8, 8], strides = [1, 1]} : vector<8x96xf32> to vector<8x8xf32>
    %45 = vector.extract_strided_slice %19 {offsets = [0, 72], sizes = [8, 8], strides = [1, 1]} : vector<8x96xf32> to vector<8x8xf32>
    %46 = arith.truncf %43 : vector<8x8xf32> to vector<8x8xbf16>
    %47 = arith.truncf %44 : vector<8x8xf32> to vector<8x8xbf16>
    %cst_19 = arith.constant dense<0.000000e+00> : vector<8x8xf32>
    %48 = tpu.matmul %46, %47, %cst_19 {dimension_numbers = #tpu.dot_dimension_numbers<[1], [1], [0], [0], [0, 0, 1, 0], [], []>} : vector<8x8xbf16>, vector<8x8xbf16>, vector<8x8xf32> -> vector<8x8xf32>
    %cst_20 = arith.constant 0.353553385 : f32
    %49 = vector.broadcast %cst_20 : f32 to vector<8x8xf32>
    %50 = arith.mulf %48, %49 : vector<8x8xf32>
    %51 = arith.addf %50, %8 : vector<8x8xf32>
    %cst_21 = arith.constant dense<0xFF800000> : vector<8xf32>
    %52 = vector.multi_reduction <maximumf>, %51, %cst_21 [1] : vector<8x8xf32> to vector<8xf32>
    %53 = vector.shape_cast %52 : vector<8xf32> to vector<8x1xf32>
    %54 = vector.broadcast %53 : vector<8x1xf32> to vector<8x8xf32>
    %55 = arith.subf %51, %54 : vector<8x8xf32>
    %56 = math.exp %55 : vector<8x8xf32>
    %cst_22 = arith.constant dense<0.000000e+00> : vector<8xf32>
    %57 = vector.multi_reduction <add>, %56, %cst_22 [1] : vector<8x8xf32> to vector<8xf32>
    %58 = vector.shape_cast %57 : vector<8xf32> to vector<8x1xf32>
    %59 = tpu.reciprocal %58 {approx = true} : vector<8x1xf32> -> vector<8x1xf32>
    %60 = vector.broadcast %59 : vector<8x1xf32> to vector<8x8xf32>
    %61 = arith.mulf %56, %60 : vector<8x8xf32>
    %62 = arith.truncf %61 : vector<8x8xf32> to vector<8x8xbf16>
    %63 = arith.truncf %45 : vector<8x8xf32> to vector<8x8xbf16>
    %cst_23 = arith.constant dense<0.000000e+00> : vector<8x8xf32>
    %64 = tpu.matmul %62, %63, %cst_23 {dimension_numbers = #tpu.dot_dimension_numbers<[1], [0], [0], [1], [0, 0, 1, 1], [], []>} : vector<8x8xbf16>, vector<8x8xbf16>, vector<8x8xf32> -> vector<8x8xf32>
    %65 = arith.truncf %64 : vector<8x8xf32> to vector<8x8xbf16>
    %66 = vector.extract_strided_slice %19 {offsets = [0, 16], sizes = [8, 8], strides = [1, 1]} : vector<8x96xf32> to vector<8x8xf32>
    %67 = vector.extract_strided_slice %19 {offsets = [0, 48], sizes = [8, 8], strides = [1, 1]} : vector<8x96xf32> to vector<8x8xf32>
    %68 = vector.extract_strided_slice %19 {offsets = [0, 80], sizes = [8, 8], strides = [1, 1]} : vector<8x96xf32> to vector<8x8xf32>
    %69 = arith.truncf %66 : vector<8x8xf32> to vector<8x8xbf16>
    %70 = arith.truncf %67 : vector<8x8xf32> to vector<8x8xbf16>
    %cst_24 = arith.constant dense<0.000000e+00> : vector<8x8xf32>
    %71 = tpu.matmul %69, %70, %cst_24 {dimension_numbers = #tpu.dot_dimension_numbers<[1], [1], [0], [0], [0, 0, 1, 0], [], []>} : vector<8x8xbf16>, vector<8x8xbf16>, vector<8x8xf32> -> vector<8x8xf32>
    %cst_25 = arith.constant 0.353553385 : f32
    %72 = vector.broadcast %cst_25 : f32 to vector<8x8xf32>
    %73 = arith.mulf %71, %72 : vector<8x8xf32>
    %74 = arith.addf %73, %8 : vector<8x8xf32>
    %cst_26 = arith.constant dense<0xFF800000> : vector<8xf32>
    %75 = vector.multi_reduction <maximumf>, %74, %cst_26 [1] : vector<8x8xf32> to vector<8xf32>
    %76 = vector.shape_cast %75 : vector<8xf32> to vector<8x1xf32>
    %77 = vector.broadcast %76 : vector<8x1xf32> to vector<8x8xf32>
    %78 = arith.subf %74, %77 : vector<8x8xf32>
    %79 = math.exp %78 : vector<8x8xf32>
    %cst_27 = arith.constant dense<0.000000e+00> : vector<8xf32>
    %80 = vector.multi_reduction <add>, %79, %cst_27 [1] : vector<8x8xf32> to vector<8xf32>
    %81 = vector.shape_cast %80 : vector<8xf32> to vector<8x1xf32>
    %82 = tpu.reciprocal %81 {approx = true} : vector<8x1xf32> -> vector<8x1xf32>
    %83 = vector.broadcast %82 : vector<8x1xf32> to vector<8x8xf32>
    %84 = arith.mulf %79, %83 : vector<8x8xf32>
    %85 = arith.truncf %84 : vector<8x8xf32> to vector<8x8xbf16>
    %86 = arith.truncf %68 : vector<8x8xf32> to vector<8x8xbf16>
    %cst_28 = arith.constant dense<0.000000e+00> : vector<8x8xf32>
    %87 = tpu.matmul %85, %86, %cst_28 {dimension_numbers = #tpu.dot_dimension_numbers<[1], [0], [0], [1], [0, 0, 1, 1], [], []>} : vector<8x8xbf16>, vector<8x8xbf16>, vector<8x8xf32> -> vector<8x8xf32>
    %88 = arith.truncf %87 : vector<8x8xf32> to vector<8x8xbf16>
    %89 = vector.extract_strided_slice %19 {offsets = [0, 24], sizes = [8, 8], strides = [1, 1]} : vector<8x96xf32> to vector<8x8xf32>
    %90 = vector.extract_strided_slice %19 {offsets = [0, 56], sizes = [8, 8], strides = [1, 1]} : vector<8x96xf32> to vector<8x8xf32>
    %91 = vector.extract_strided_slice %19 {offsets = [0, 88], sizes = [8, 8], strides = [1, 1]} : vector<8x96xf32> to vector<8x8xf32>
    %92 = arith.truncf %89 : vector<8x8xf32> to vector<8x8xbf16>
    %93 = arith.truncf %90 : vector<8x8xf32> to vector<8x8xbf16>
    %cst_29 = arith.constant dense<0.000000e+00> : vector<8x8xf32>
    %94 = tpu.matmul %92, %93, %cst_29 {dimension_numbers = #tpu.dot_dimension_numbers<[1], [1], [0], [0], [0, 0, 1, 0], [], []>} : vector<8x8xbf16>, vector<8x8xbf16>, vector<8x8xf32> -> vector<8x8xf32>
    %cst_30 = arith.constant 0.353553385 : f32
    %95 = vector.broadcast %cst_30 : f32 to vector<8x8xf32>
    %96 = arith.mulf %94, %95 : vector<8x8xf32>
    %97 = arith.addf %96, %8 : vector<8x8xf32>
    %cst_31 = arith.constant dense<0xFF800000> : vector<8xf32>
    %98 = vector.multi_reduction <maximumf>, %97, %cst_31 [1] : vector<8x8xf32> to vector<8xf32>
    %99 = vector.shape_cast %98 : vector<8xf32> to vector<8x1xf32>
    %100 = vector.broadcast %99 : vector<8x1xf32> to vector<8x8xf32>
    %101 = arith.subf %97, %100 : vector<8x8xf32>
    %102 = math.exp %101 : vector<8x8xf32>
    %cst_32 = arith.constant dense<0.000000e+00> : vector<8xf32>
    %103 = vector.multi_reduction <add>, %102, %cst_32 [1] : vector<8x8xf32> to vector<8xf32>
    %104 = vector.shape_cast %103 : vector<8xf32> to vector<8x1xf32>
    %105 = tpu.reciprocal %104 {approx = true} : vector<8x1xf32> -> vector<8x1xf32>
    %106 = vector.broadcast %105 : vector<8x1xf32> to vector<8x8xf32>
    %107 = arith.mulf %102, %106 : vector<8x8xf32>
    %108 = arith.truncf %107 : vector<8x8xf32> to vector<8x8xbf16>
    %109 = arith.truncf %91 : vector<8x8xf32> to vector<8x8xbf16>
    %cst_33 = arith.constant dense<0.000000e+00> : vector<8x8xf32>
    %110 = tpu.matmul %108, %109, %cst_33 {dimension_numbers = #tpu.dot_dimension_numbers<[1], [0], [0], [1], [0, 0, 1, 1], [], []>} : vector<8x8xbf16>, vector<8x8xbf16>, vector<8x8xf32> -> vector<8x8xf32>
    %111 = arith.truncf %110 : vector<8x8xf32> to vector<8x8xbf16>
    %112 = tpu.concatenate %42, %65, %88, %111 in 1 : vector<8x8xbf16>, vector<8x8xbf16>, vector<8x8xbf16>, vector<8x8xbf16> -> vector<8x32xbf16>
    %cst_34 = arith.constant dense<0.000000e+00> : vector<8x32xf32>
    %113 = tpu.matmul %112, %14, %cst_34 {dimension_numbers = #tpu.dot_dimension_numbers<[1], [0], [0], [1], [0, 0, 1, 1], [], []>} : vector<8x32xbf16>, vector<32x32xbf16>, vector<8x32xf32> -> vector<8x32xf32>
    %c0_35 = arith.constant 0 : index
    %c0_36 = arith.constant 0 : index
    %c0_37 = arith.constant 0 : index
    %114 = vector.load %arg8[%c0_35, %c0_36, %c0_37] : memref<2x8x32xf32, #tpu.memory_space<vmem>>, vector<1x8x32xf32>
    %115 = vector.shape_cast %114 : vector<1x8x32xf32> to vector<8x32xf32>
    %116 = arith.addf %115, %113 : vector<8x32xf32>
    %c0_38 = arith.constant 0 : index
    %c0_39 = arith.constant 0 : index
    %c0_40 = arith.constant 0 : index
    %117 = vector.load %arg8[%c0_38, %c0_39, %c0_40] : memref<2x8x32xf32, #tpu.memory_space<vmem>>, vector<1x8x32xf32>
    %118 = vector.shape_cast %117 : vector<1x8x32xf32> to vector<8x32xf32>
    %119 = vector.shape_cast %116 : vector<8x32xf32> to vector<1x8x32xf32>
    tpu.vector_store %arg8[%c0_38, %c0_39, %c0_40], %119 {strides = array<i32>} : memref<2x8x32xf32, #tpu.memory_space<vmem>>, vector<1x8x32xf32>,
    %c1 = arith.constant 1 : index
    %c0_41 = arith.constant 0 : index
    %c0_42 = arith.constant 0 : index
    %120 = vector.load %arg2[%c1, %c0_41, %c0_42] : memref<2x8x32xbf16, #tpu.memory_space<vmem>>, vector<1x8x32xbf16>
    %121 = vector.shape_cast %120 : vector<1x8x32xbf16> to vector<8x32xbf16>
    %cst_43 = arith.constant dense<0.000000e+00> : vector<8x96xf32>
    %122 = tpu.matmul %121, %10, %cst_43 {dimension_numbers = #tpu.dot_dimension_numbers<[1], [1], [0], [0], [0, 0, 1, 0], [], []>} : vector<8x32xbf16>, vector<96x32xbf16>, vector<8x96xf32> -> vector<8x96xf32>
    %123 = vector.broadcast %12 : vector<1x96xf32> to vector<8x96xf32>
    %124 = arith.addf %122, %123 : vector<8x96xf32>
    %125 = vector.extract_strided_slice %124 {offsets = [0, 0], sizes = [8, 8], strides = [1, 1]} : vector<8x96xf32> to vector<8x8xf32>
    %126 = vector.extract_strided_slice %124 {offsets = [0, 32], sizes = [8, 8], strides = [1, 1]} : vector<8x96xf32> to vector<8x8xf32>
    %127 = vector.extract_strided_slice %124 {offsets = [0, 64], sizes = [8, 8], strides = [1, 1]} : vector<8x96xf32> to vector<8x8xf32>
    %128 = arith.truncf %125 : vector<8x8xf32> to vector<8x8xbf16>
    %129 = arith.truncf %126 : vector<8x8xf32> to vector<8x8xbf16>
    %cst_44 = arith.constant dense<0.000000e+00> : vector<8x8xf32>
    %130 = tpu.matmul %128, %129, %cst_44 {dimension_numbers = #tpu.dot_dimension_numbers<[1], [1], [0], [0], [0, 0, 1, 0], [], []>} : vector<8x8xbf16>, vector<8x8xbf16>, vector<8x8xf32> -> vector<8x8xf32>
    %cst_45 = arith.constant 0.353553385 : f32
    %131 = vector.broadcast %cst_45 : f32 to vector<8x8xf32>
    %132 = arith.mulf %130, %131 : vector<8x8xf32>
    %133 = arith.addf %132, %8 : vector<8x8xf32>
    %cst_46 = arith.constant dense<0xFF800000> : vector<8xf32>
    %134 = vector.multi_reduction <maximumf>, %133, %cst_46 [1] : vector<8x8xf32> to vector<8xf32>
    %135 = vector.shape_cast %134 : vector<8xf32> to vector<8x1xf32>
    %136 = vector.broadcast %135 : vector<8x1xf32> to vector<8x8xf32>
    %137 = arith.subf %133, %136 : vector<8x8xf32>
    %138 = math.exp %137 : vector<8x8xf32>
    %cst_47 = arith.constant dense<0.000000e+00> : vector<8xf32>
    %139 = vector.multi_reduction <add>, %138, %cst_47 [1] : vector<8x8xf32> to vector<8xf32>
    %140 = vector.shape_cast %139 : vector<8xf32> to vector<8x1xf32>
    %141 = tpu.reciprocal %140 {approx = true} : vector<8x1xf32> -> vector<8x1xf32>
    %142 = vector.broadcast %141 : vector<8x1xf32> to vector<8x8xf32>
    %143 = arith.mulf %138, %142 : vector<8x8xf32>
    %144 = arith.truncf %143 : vector<8x8xf32> to vector<8x8xbf16>
    %145 = arith.truncf %127 : vector<8x8xf32> to vector<8x8xbf16>
    %cst_48 = arith.constant dense<0.000000e+00> : vector<8x8xf32>
    %146 = tpu.matmul %144, %145, %cst_48 {dimension_numbers = #tpu.dot_dimension_numbers<[1], [0], [0], [1], [0, 0, 1, 1], [], []>} : vector<8x8xbf16>, vector<8x8xbf16>, vector<8x8xf32> -> vector<8x8xf32>
    %147 = arith.truncf %146 : vector<8x8xf32> to vector<8x8xbf16>
    %148 = vector.extract_strided_slice %124 {offsets = [0, 8], sizes = [8, 8], strides = [1, 1]} : vector<8x96xf32> to vector<8x8xf32>
    %149 = vector.extract_strided_slice %124 {offsets = [0, 40], sizes = [8, 8], strides = [1, 1]} : vector<8x96xf32> to vector<8x8xf32>
    %150 = vector.extract_strided_slice %124 {offsets = [0, 72], sizes = [8, 8], strides = [1, 1]} : vector<8x96xf32> to vector<8x8xf32>
    %151 = arith.truncf %148 : vector<8x8xf32> to vector<8x8xbf16>
    %152 = arith.truncf %149 : vector<8x8xf32> to vector<8x8xbf16>
    %cst_49 = arith.constant dense<0.000000e+00> : vector<8x8xf32>
    %153 = tpu.matmul %151, %152, %cst_49 {dimension_numbers = #tpu.dot_dimension_numbers<[1], [1], [0], [0], [0, 0, 1, 0], [], []>} : vector<8x8xbf16>, vector<8x8xbf16>, vector<8x8xf32> -> vector<8x8xf32>
    %cst_50 = arith.constant 0.353553385 : f32
    %154 = vector.broadcast %cst_50 : f32 to vector<8x8xf32>
    %155 = arith.mulf %153, %154 : vector<8x8xf32>
    %156 = arith.addf %155, %8 : vector<8x8xf32>
    %cst_51 = arith.constant dense<0xFF800000> : vector<8xf32>
    %157 = vector.multi_reduction <maximumf>, %156, %cst_51 [1] : vector<8x8xf32> to vector<8xf32>
    %158 = vector.shape_cast %157 : vector<8xf32> to vector<8x1xf32>
    %159 = vector.broadcast %158 : vector<8x1xf32> to vector<8x8xf32>
    %160 = arith.subf %156, %159 : vector<8x8xf32>
    %161 = math.exp %160 : vector<8x8xf32>
    %cst_52 = arith.constant dense<0.000000e+00> : vector<8xf32>
    %162 = vector.multi_reduction <add>, %161, %cst_52 [1] : vector<8x8xf32> to vector<8xf32>
    %163 = vector.shape_cast %162 : vector<8xf32> to vector<8x1xf32>
    %164 = tpu.reciprocal %163 {approx = true} : vector<8x1xf32> -> vector<8x1xf32>
    %165 = vector.broadcast %164 : vector<8x1xf32> to vector<8x8xf32>
    %166 = arith.mulf %161, %165 : vector<8x8xf32>
    %167 = arith.truncf %166 : vector<8x8xf32> to vector<8x8xbf16>
    %168 = arith.truncf %150 : vector<8x8xf32> to vector<8x8xbf16>
    %cst_53 = arith.constant dense<0.000000e+00> : vector<8x8xf32>
    %169 = tpu.matmul %167, %168, %cst_53 {dimension_numbers = #tpu.dot_dimension_numbers<[1], [0], [0], [1], [0, 0, 1, 1], [], []>} : vector<8x8xbf16>, vector<8x8xbf16>, vector<8x8xf32> -> vector<8x8xf32>
    %170 = arith.truncf %169 : vector<8x8xf32> to vector<8x8xbf16>
    %171 = vector.extract_strided_slice %124 {offsets = [0, 16], sizes = [8, 8], strides = [1, 1]} : vector<8x96xf32> to vector<8x8xf32>
    %172 = vector.extract_strided_slice %124 {offsets = [0, 48], sizes = [8, 8], strides = [1, 1]} : vector<8x96xf32> to vector<8x8xf32>
    %173 = vector.extract_strided_slice %124 {offsets = [0, 80], sizes = [8, 8], strides = [1, 1]} : vector<8x96xf32> to vector<8x8xf32>
    %174 = arith.truncf %171 : vector<8x8xf32> to vector<8x8xbf16>
    %175 = arith.truncf %172 : vector<8x8xf32> to vector<8x8xbf16>
    %cst_54 = arith.constant dense<0.000000e+00> : vector<8x8xf32>
    %176 = tpu.matmul %174, %175, %cst_54 {dimension_numbers = #tpu.dot_dimension_numbers<[1], [1], [0], [0], [0, 0, 1, 0], [], []>} : vector<8x8xbf16>, vector<8x8xbf16>, vector<8x8xf32> -> vector<8x8xf32>
    %cst_55 = arith.constant 0.353553385 : f32
    %177 = vector.broadcast %cst_55 : f32 to vector<8x8xf32>
    %178 = arith.mulf %176, %177 : vector<8x8xf32>
    %179 = arith.addf %178, %8 : vector<8x8xf32>
    %cst_56 = arith.constant dense<0xFF800000> : vector<8xf32>
    %180 = vector.multi_reduction <maximumf>, %179, %cst_56 [1] : vector<8x8xf32> to vector<8xf32>
    %181 = vector.shape_cast %180 : vector<8xf32> to vector<8x1xf32>
    %182 = vector.broadcast %181 : vector<8x1xf32> to vector<8x8xf32>
    %183 = arith.subf %179, %182 : vector<8x8xf32>
    %184 = math.exp %183 : vector<8x8xf32>
    %cst_57 = arith.constant dense<0.000000e+00> : vector<8xf32>
    %185 = vector.multi_reduction <add>, %184, %cst_57 [1] : vector<8x8xf32> to vector<8xf32>
    %186 = vector.shape_cast %185 : vector<8xf32> to vector<8x1xf32>
    %187 = tpu.reciprocal %186 {approx = true} : vector<8x1xf32> -> vector<8x1xf32>
    %188 = vector.broadcast %187 : vector<8x1xf32> to vector<8x8xf32>
    %189 = arith.mulf %184, %188 : vector<8x8xf32>
    %190 = arith.truncf %189 : vector<8x8xf32> to vector<8x8xbf16>
    %191 = arith.truncf %173 : vector<8x8xf32> to vector<8x8xbf16>
    %cst_58 = arith.constant dense<0.000000e+00> : vector<8x8xf32>
    %192 = tpu.matmul %190, %191, %cst_58 {dimension_numbers = #tpu.dot_dimension_numbers<[1], [0], [0], [1], [0, 0, 1, 1], [], []>} : vector<8x8xbf16>, vector<8x8xbf16>, vector<8x8xf32> -> vector<8x8xf32>
    %193 = arith.truncf %192 : vector<8x8xf32> to vector<8x8xbf16>
    %194 = vector.extract_strided_slice %124 {offsets = [0, 24], sizes = [8, 8], strides = [1, 1]} : vector<8x96xf32> to vector<8x8xf32>
    %195 = vector.extract_strided_slice %124 {offsets = [0, 56], sizes = [8, 8], strides = [1, 1]} : vector<8x96xf32> to vector<8x8xf32>
    %196 = vector.extract_strided_slice %124 {offsets = [0, 88], sizes = [8, 8], strides = [1, 1]} : vector<8x96xf32> to vector<8x8xf32>
    %197 = arith.truncf %194 : vector<8x8xf32> to vector<8x8xbf16>
    %198 = arith.truncf %195 : vector<8x8xf32> to vector<8x8xbf16>
    %cst_59 = arith.constant dense<0.000000e+00> : vector<8x8xf32>
    %199 = tpu.matmul %197, %198, %cst_59 {dimension_numbers = #tpu.dot_dimension_numbers<[1], [1], [0], [0], [0, 0, 1, 0], [], []>} : vector<8x8xbf16>, vector<8x8xbf16>, vector<8x8xf32> -> vector<8x8xf32>
    %cst_60 = arith.constant 0.353553385 : f32
    %200 = vector.broadcast %cst_60 : f32 to vector<8x8xf32>
    %201 = arith.mulf %199, %200 : vector<8x8xf32>
    %202 = arith.addf %201, %8 : vector<8x8xf32>
    %cst_61 = arith.constant dense<0xFF800000> : vector<8xf32>
    %203 = vector.multi_reduction <maximumf>, %202, %cst_61 [1] : vector<8x8xf32> to vector<8xf32>
    %204 = vector.shape_cast %203 : vector<8xf32> to vector<8x1xf32>
    %205 = vector.broadcast %204 : vector<8x1xf32> to vector<8x8xf32>
    %206 = arith.subf %202, %205 : vector<8x8xf32>
    %207 = math.exp %206 : vector<8x8xf32>
    %cst_62 = arith.constant dense<0.000000e+00> : vector<8xf32>
    %208 = vector.multi_reduction <add>, %207, %cst_62 [1] : vector<8x8xf32> to vector<8xf32>
    %209 = vector.shape_cast %208 : vector<8xf32> to vector<8x1xf32>
    %210 = tpu.reciprocal %209 {approx = true} : vector<8x1xf32> -> vector<8x1xf32>
    %211 = vector.broadcast %210 : vector<8x1xf32> to vector<8x8xf32>
    %212 = arith.mulf %207, %211 : vector<8x8xf32>
    %213 = arith.truncf %212 : vector<8x8xf32> to vector<8x8xbf16>
    %214 = arith.truncf %196 : vector<8x8xf32> to vector<8x8xbf16>
    %cst_63 = arith.constant dense<0.000000e+00> : vector<8x8xf32>
    %215 = tpu.matmul %213, %214, %cst_63 {dimension_numbers = #tpu.dot_dimension_numbers<[1], [0], [0], [1], [0, 0, 1, 1], [], []>} : vector<8x8xbf16>, vector<8x8xbf16>, vector<8x8xf32> -> vector<8x8xf32>
    %216 = arith.truncf %215 : vector<8x8xf32> to vector<8x8xbf16>
    %217 = tpu.concatenate %147, %170, %193, %216 in 1 : vector<8x8xbf16>, vector<8x8xbf16>, vector<8x8xbf16>, vector<8x8xbf16> -> vector<8x32xbf16>
    %cst_64 = arith.constant dense<0.000000e+00> : vector<8x32xf32>
    %218 = tpu.matmul %217, %14, %cst_64 {dimension_numbers = #tpu.dot_dimension_numbers<[1], [0], [0], [1], [0, 0, 1, 1], [], []>} : vector<8x32xbf16>, vector<32x32xbf16>, vector<8x32xf32> -> vector<8x32xf32>
    %c1_65 = arith.constant 1 : index
    %c0_66 = arith.constant 0 : index
    %c0_67 = arith.constant 0 : index
    %219 = vector.load %arg8[%c1_65, %c0_66, %c0_67] : memref<2x8x32xf32, #tpu.memory_space<vmem>>, vector<1x8x32xf32>
    %220 = vector.shape_cast %219 : vector<1x8x32xf32> to vector<8x32xf32>
    %221 = arith.addf %220, %218 : vector<8x32xf32>
    %c1_68 = arith.constant 1 : index
    %c0_69 = arith.constant 0 : index
    %c0_70 = arith.constant 0 : index
    %222 = vector.load %arg8[%c1_68, %c0_69, %c0_70] : memref<2x8x32xf32, #tpu.memory_space<vmem>>, vector<1x8x32xf32>
    %223 = vector.shape_cast %222 : vector<1x8x32xf32> to vector<8x32xf32>
    %224 = vector.shape_cast %221 : vector<8x32xf32> to vector<1x8x32xf32>
    tpu.vector_store %arg8[%c1_68, %c0_69, %c0_70], %224 {strides = array<i32>} : memref<2x8x32xf32, #tpu.memory_space<vmem>>, vector<1x8x32xf32>,
    %c0_i32_71 = arith.constant 0 : i32
    %225 = arith.cmpi eq, %arg1, %c0_i32_71 : i32
    %226 = arith.extui %225 : i1 to i32
    %c0_i32_72 = arith.constant 0 : i32
    %227 = arith.cmpi ne, %226, %c0_i32_72 : i32
    scf.if %227 {
      %c0_73 = arith.constant 0 : index
      %c0_74 = arith.constant 0 : index
      %c0_75 = arith.constant 0 : index
      %228 = vector.load %arg8[%c0_73, %c0_74, %c0_75] : memref<2x8x32xf32, #tpu.memory_space<vmem>>, vector<2x8x32xf32>
      %c0_76 = arith.constant 0 : index
      %c0_77 = arith.constant 0 : index
      %c0_78 = arith.constant 0 : index
      %229 = vector.load %arg7[%c0_76, %c0_77, %c0_78] : memref<2x8x32xf32, #tpu.memory_space<vmem>>, vector<2x8x32xf32>
      tpu.vector_store %arg7[%c0_76, %c0_77, %c0_78], %228 {strides = array<i32>} : memref<2x8x32xf32, #tpu.memory_space<vmem>>, vector<2x8x32xf32>,
    } else {
    }
    return
  }
  func.func @transform_0(%arg0: i32, %arg1: i32) -> (i32, i32, i32) {
    %c0_i32 = arith.constant 0 : i32
    %c0_i32_0 = arith.constant 0 : i32
    %c0_i32_1 = arith.constant 0 : i32
    return %arg0, %c0_i32, %c0_i32_0 : i32, i32, i32
  }
  func.func @transform_1(%arg0: i32, %arg1: i32) -> (i32, i32, i32) {
    %c0_i32 = arith.constant 0 : i32
    %c0_i32_0 = arith.constant 0 : i32
    %c0_i32_1 = arith.constant 0 : i32
    return %arg1, %c0_i32, %c0_i32_0 : i32, i32, i32
  }
  func.func @transform_2(%arg0: i32, %arg1: i32) -> (i32, i32, i32) {
    %c0_i32 = arith.constant 0 : i32
    %c0_i32_0 = arith.constant 0 : i32
    %c0_i32_1 = arith.constant 0 : i32
    return %arg1, %c0_i32, %c0_i32_0 : i32, i32, i32
  }
  func.func @transform_3(%arg0: i32, %arg1: i32) -> (i32, i32, i32) {
    %c0_i32 = arith.constant 0 : i32
    %c0_i32_0 = arith.constant 0 : i32
    %c0_i32_1 = arith.constant 0 : i32
    return %arg1, %c0_i32, %c0_i32_0 : i32, i32, i32
  }
  func.func @transform_4(%arg0: i32, %arg1: i32) -> (i32, i32) {
    %c0_i32 = arith.constant 0 : i32
    %c0_i32_0 = arith.constant 0 : i32
    %c0_i32_1 = arith.constant 0 : i32
    return %c0_i32, %c0_i32_0 : i32, i32
  }
  func.func @transform_5(%arg0: i32, %arg1: i32) -> (i32, i32, i32) {
    %c0_i32 = arith.constant 0 : i32
    %c0_i32_0 = arith.constant 0 : i32
    %c0_i32_1 = arith.constant 0 : i32
    return %arg0, %c0_i32, %c0_i32_0 : i32, i32, i32
  }
}

</mosaic_0001>

<bundles_post_ra>
// kernel: tpu_custom_call.1
= control target key start
LH: loop header
LB: loop body
LE: loop exit
PB: predicated region body
PF: predicated region fallthrough
CT: control target
= control target key end

     0   :  { %vm33_vm0 = vcmask 261120   ;;  %v1577_v0 = vmov 0.0   ;;  %vm1578_vm1 = vmmov 0   ;;  %s1918_s0 = inlined_call_operand.vmem [shape: bf16[2,8,32], index: 0, kind: input, shape index: {}]   ;;  %s1919_s1 = inlined_call_operand.vmem [shape: bf16[1,96,32], index: 1, kind: input, shape index: {}]   ;;  %s1920_s2 = inlined_call_operand.vmem [shape: f32[1,1,96], index: 2, kind: input, shape index: {}]   ;;  %s1921_s3 = inlined_call_operand.vmem [shape: bf16[1,32,32], index: 3, kind: input, shape index: {}]   ;;  %s1922_s4 = inlined_call_operand.vmem [shape: f32[1,32], index: 4, kind: input, shape index: {}]   ;;  %s1923_s5 = inlined_call_operand.hbm [shape: f32[2,8,32], index: 5, kind: output, shape index: {}]  }
   0x1   :  { %1352 = vmatprep.subr.bf16.mxu0 %v1577_v0  ;;  %v1515_v1 = vld [vmem:[%s1919_s1 + $0x28] sm:$0xff]   ;;  %1368 = vmatprep.subr.bf16.mxu1 %v1577_v0  ;;  %v1516_v3 = vld [vmem:[%s1919_s1 + $0x20] sm:$0xff]  }
   0x2   :  { %1364 = vmatprep.mubr.msk.bf16.mxu0 %vm1578_vm1, %v1577_v0  ;;  %1370 = vmatprep.mubr.msk.bf16.mxu1 %vm1578_vm1, %v1577_v0  ;;  %v1636_v2 = vsel %vm33_vm0, %v1515_v1, 0  ;;  %v1644_v4 = vsel %vm33_vm0, %v1516_v3, 0 }
   0x3   :  { %1353 = vmatpush3.bf16.xpose.msra.mxu0 %v1636_v2 }
   0x4   :  { %1354 = vmatprep.subr.bf16.mxu0 %v1577_v0 }
   0x5   :  { %10 = vsyncpa [#allocation4], 0  ;;  %v1517_v5 = vld [vmem:[%s1919_s1 + $0x18] sm:$0xff]   ;;  %v1518_v7 = vld [vmem:[%s1919_s1 + $0x10] sm:$0xff]   ;;  %s1580_s9 = smov 96   ;;  %vm162_vm2 = vcmask 64512   ;;  %v36_v25 = vlaneseq }
   0x6   :  { %v1652_v6 = vsel %vm33_vm0, %v1517_v5, 0  ;;  %v1660_v8 = vsel %vm33_vm0, %v1518_v7, 0  ;;  %v1519_v9 = vld [vmem:[%s1919_s1 + $0x8] sm:$0xff]   ;;  %v1520_v11 = vld [vmem:[%s1919_s1] sm:$0xff]   ;;  %s1579_s1 = smov 64   ;;  %vm228_vm3 = vcmask 1043456  }
   0x7   :  { %v1668_v10 = vsel %vm33_vm0, %v1519_v9, 0  ;;  %v1676_v12 = vsel %vm33_vm0, %v1520_v11, 0  ;;  %v59_v13 = vld [vmem:[%s1918_s0] sm:$0xf]  ;;  %v37_v26 = vshrl.u32 %v36_v25, 7  ;;  %v39_v27 = vand.u32 127, %v36_v25 }
   0x8   :  { %v1689_v14 = vld [vmem:[%s1920_s2] ss:$0 sm:$0xff]  ;;  %v1581_v29 = vmov -1e+30   ;;  %s1582_s2 = smov 56   ;;  %s1583_s10 = smov 88  }
   0x9   :  { %vm40_vm4 = vcmp.ge.s32.totalorder %v37_v26, %v39_v27  ;;  %s1584_s11 = smov 120   ;;  %s1585_s12 = smov 72   ;;  %vm624_vm5 = vcmask 130048   ;;  %vm627_vm6 = vcmask 195584  }
   0xa   :  { %v1706_v30 = vsel %vm40_vm4, 0.0, %v1581_v29  ;;  %s1586_s13 = smov 80   ;;  %s1587_s14 = smov 112  }
   0xb   :  { %1355 = vmatpush3.bf16.xpose.msra.mxu0 %v1644_v4  ;;  %s1588_s15 = smov 104   ;;  %s1589_s16 = smov 40  }
   0xc   :  { %1356 = vmatprep.subr.bf16.mxu0 %v1577_v0  ;;  %s1590_s17 = smov 48   ;;  %s1591_s18 = smov 8  }
   0xd   :  { %s1593_s25 = smov 24  }
  0x13   :  { %1357 = vmatpush3.bf16.xpose.msra.mxu0 %v1652_v6 }
  0x14   :  { %1358 = vmatprep.subr.bf16.mxu0 %v1577_v0 }
  0x1b   :  { %1359 = vmatpush3.bf16.xpose.msra.mxu0 %v1660_v8 }
  0x1c   :  { %1360 = vmatprep.subr.bf16.mxu0 %v1577_v0 }
  0x23   :  { %1361 = vmatpush3.bf16.xpose.msra.mxu0 %v1668_v10 }
  0x24   :  { %1362 = vmatprep.subr.bf16.mxu0 %v1577_v0 }
  0x2b   :  { %1363 = vmatpush3.bf16.xpose.msra.mxu0 %v1676_v12 }
  0x2c   :  { %1404 = vmatprep.subr.bf16.mxu0 %v1577_v0 }
  0x32   :  { %1365 = vmatmul.mubr.msk.bf16.vlgmr.msra.gmra.mxu0 %vm33_vm0, %v59_v13 }
  0x33   :  { %1406 = vmatprep.mubr.msk.bf16.mxu0 %vm1578_vm1, %v1577_v0 }
  0xf2   :  { %v152_v15 = vpop.f32.mrf.mxu0 }
  0xf3   :  { %v153_v16 = vadd.f32 %v1689_v14, %v152_v15 }
  0xf4   :  { %v1366_v17 = vpop.f32.mrf.mxu0 }
  0xf5   :  { %v1692_v18 = vpack.c.bf16 %v153_v16, %v153_v16 }
  0xf6   :  { %v155_v19 = vpop.f32.mrf.mxu0 }
  0xf7   :  { %223 = vrot.lane.b32.xlu1 %v1692_v18, %s1579_s1  ;;  %160 = vrot.lane.b32.xlu0 %v1692_v18, %s1580_s9 }
  0xf8   :  { %v1367_v20 = vpop.f32.mrf.mxu0 }
 0x169   :  { %v161_v21 = vpop.permute.xlu0 %160  ;;  %v224_v23 = vpop.permute.xlu1 %223 }
 0x16a   :  { %v167_v22 = vsel %vm162_vm2, %v161_v21, 0  ;;  %v230_v24 = vsel %vm228_vm3, %v224_v23, 0 }
 0x16b   :  { %1369 = vmatpush3.bf16.xpose.msra.mxu1 %v167_v22 }
 0x16c   :  { %1374 = vmatprep.subr.bf16.mxu1 %v1577_v0 }
 0x172   :  { %1371 = vmatmul.mubr.msk.bf16.vlgmr.msra.gmra.mxu1 %vm162_vm2, %v1692_v18 }
 0x173   :  { %1375 = vmatpush3.bf16.msra.mxu1 %v230_v24  ;;  %1376 = vmatprep.mubr.msk.bf16.mxu1 %vm1578_vm1, %v1577_v0 }
 0x174   :  { %1380 = vmatprep.subr.bf16.mxu1 %v1577_v0 }
 0x232   :  { %v203_v28 = vpop.f32.mrf.mxu1 }
 0x233   :  { %v209_v31 = vmul.f32 0.35355338, %v203_v28 }
 0x234   :  { %v1372_v32 = vpop.f32.mrf.mxu1 }
 0x235   :  { %v210_v33 = vadd.f32 %v209_v31, %v1706_v30 }
 0x236   :  { %v206_v34 = vpop.f32.mrf.mxu1 }
 0x237   :  { %v211_v35 = vsel %vm162_vm2, %v210_v33, -inf }
 0x238   :  { %212 = vmax.xlane.f32.xlu0 %v211_v35  ;;  %v1373_v36 = vpop.f32.mrf.mxu1 }
 0x24e   :  { %337 = vrot.lane.b32.xlu0 %v1692_v18, %s1582_s2 }
 0x2c1   :  { %v213_v37 = vpop.xlane.xlu0 %212 }
 0x2c2   :  { %v214_v38 = vsub.f32 %v210_v33, %v213_v37 }
 0x2c4   :  { %v215_v39 = vmul.f32 1.442695, %v214_v38 }
 0x2c5   :  { %v338_v48 = vpop.permute.xlu0 %337 }
 0x2c6   :  { %1523 = vpow2.f32 %v215_v39  ;;  %v343_v50 = vsel %vm228_vm3, %v338_v48, 0 }
 0x2d3   :  { %v1524_v40 = vpop.eup %1523 }
 0x2d4   :  { %v217_v41 = vsel %vm162_vm2, %v1524_v40, 0.0 }
 0x2d5   :  { %218 = vadd.xlane.f32.xlu1 %v217_v41 }
 0x2e6   :  { %275 = vrot.lane.b32.xlu1 %v1692_v18, %s1583_s10 }
 0x2ea   :  { %273 = vrot.lane.b32.xlu1 %v1692_v18, %s1584_s11 }
 0x35e   :  { %v219_v42 = vpop.xlane.xlu1 %218 }
 0x35f   :  { %1525 = vrcp.f32 %v219_v42 }
 0x362   :  { %v276_v45 = vpop.permute.xlu1 %275 }
 0x363   :  { %v281_v47 = vsel %vm162_vm2, %v276_v45, 0 }
 0x366   :  { %v274_v49 = vpop.permute.xlu1 %273 }
 0x36c   :  { %v1526_v43 = vpop.eup %1525 }
 0x36d   :  { %v221_v44 = vmul.f32 %v1526_v43, %v1524_v40 }
 0x36f   :  { %v222_v46 = vpack.c.bf16 %v221_v44, %v221_v44 }
 0x371   :  { %1377 = vmatmul.mubr.msk.bf16.vlgmr.msra.gmra.mxu1 %vm162_vm2, %v222_v46 }
 0x372   :  { %1381 = vmatpush3.bf16.xpose.msra.mxu1 %v281_v47  ;;  %1382 = vmatprep.mubr.msk.bf16.mxu1 %vm1578_vm1, %v1577_v0 }
 0x373   :  { %1386 = vmatprep.subr.bf16.mxu1 %v1577_v0 }
 0x379   :  { %1383 = vmatmul.mubr.msk.bf16.vlgmr.msra.gmra.mxu1 %vm162_vm2, %v274_v49 }
 0x37a   :  { %1387 = vmatpush3.bf16.msra.mxu1 %v343_v50  ;;  %1388 = vmatprep.mubr.msk.bf16.mxu1 %vm1578_vm1, %v1577_v0 }
 0x37b   :  { %1392 = vmatprep.subr.bf16.mxu1 %v1577_v0 }
 0x431   :  { %v1727_v51 = vpop.f32.mrf.mxu1 }
 0x433   :  { %v1378_v52 = vpop.f32.mrf.mxu1 }
 0x435   :  { %v269_v53 = vpop.f32.mrf.mxu1 }
 0x437   :  { %v1379_v54 = vpop.f32.mrf.mxu1 }
 0x439   :  { %v317_v55 = vpop.f32.mrf.mxu1 }
 0x43a   :  { %v323_v56 = vmul.f32 0.35355338, %v317_v55 }
 0x43b   :  { %v1384_v57 = vpop.f32.mrf.mxu1 }
 0x43c   :  { %v324_v58 = vadd.f32 %v323_v56, %v1706_v30 }
 0x43d   :  { %v320_v59 = vpop.f32.mrf.mxu1 }
 0x43e   :  { %v325_v60 = vsel %vm162_vm2, %v324_v58, -inf }
 0x43f   :  { %326 = vmax.xlane.f32.xlu1 %v325_v60  ;;  %v1385_v61 = vpop.f32.mrf.mxu1 }
 0x450   :  { %501 = vrot.lane.b32.xlu1 %v1692_v18, %s1585_s12 }
 0x4c8   :  { %v327_v62 = vpop.xlane.xlu1 %326 }
 0x4c9   :  { %v328_v63 = vsub.f32 %v324_v58, %v327_v62 }
 0x4cb   :  { %v329_v1 = vmul.f32 1.442695, %v328_v63 }
 0x4cc   :  { %v502_v3 = vpop.permute.xlu1 %501 }
 0x4cd   :  { %1527 = vpow2.f32 %v329_v1  ;;  %v507_v5 = vsel %vm162_vm2, %v502_v3, 0 }
 0x4ce   :  { %1405 = vmatpush3.bf16.xpose.msra.mxu0 %v507_v5 }
 0x4cf   :  { %1416 = vmatprep.subr.bf16.mxu0 %v1577_v0 }
 0x4da   :  { %v1528_v7 = vpop.eup %1527 }
 0x4db   :  { %v331_v9 = vsel %vm162_vm2, %v1528_v7, 0.0 }
 0x4dc   :  { %332 = vadd.xlane.f32.xlu0 %v331_v9 }
 0x4f2   :  { %388 = vrot.lane.b32.xlu0 %v1692_v18, %s1586_s13 }
 0x4f6   :  { %386 = vrot.lane.b32.xlu0 %v1692_v18, %s1587_s14 }
 0x4fa   :  { %499 = vrot.lane.b32.xlu0 %v1692_v18, %s1588_s15 }
 0x565   :  { %v333_v11 = vpop.xlane.xlu0 %332 }
 0x566   :  { %1529 = vrcp.f32 %v333_v11 }
 0x569   :  { %v389_v13 = vpop.permute.xlu0 %388 }
 0x56a   :  { %v394_v21 = vsel %vm162_vm2, %v389_v13, 0 }
 0x56d   :  { %v387_v15 = vpop.permute.xlu0 %386 }
 0x571   :  { %v500_v16 = vpop.permute.xlu0 %499 }
 0x572   :  { %1407 = vmatmul.mubr.msk.bf16.vlgmr.msra.gmra.mxu0 %vm162_vm2, %v500_v16  ;;  %v1269_v16 = vld [vmem:[%s1922_s4] ss:$0 sm:$0xff]  ;;  %s1594_s4 = smov [#allocation3]  }
 0x573   :  { %v1530_v17 = vpop.eup %1529  ;;  %1420 = vmatprep.mubr.msk.bf16.mxu0 %vm1578_vm1, %v1577_v0  ;;  %34 = vst.msk [vmem:[#allocation2] sm:$0xff] %vm33_vm0, %v1269_v16  ;;  %35 = vst.msk [vmem:[#allocation2 + $0x8] sm:$0xff] %vm33_vm0, %v1269_v16  ;;  %s1258_s27 = sshll.u32 %s1594_s4, 4  ;;  %s1259_s27 = int_to_ptr.vmem [resolvable:$true] %s1258_s27 }
 0x574   :  { %v335_v19 = vmul.f32 %v1530_v17, %v1528_v7  ;;  %s1555_s28 = scalar_lea.vmem %s1259_s27, 256  ;;  %p1560_p1 = scmp.lt.s32.totalorder %s1259_s27, %s1259_s27 }
 0x575   :  { %p1556_p0 = scmp.ne.s32.totalorder %s1259_s27, %s1555_s28  ;;  %p1561_p2 = scmp.lt.s32.totalorder %s1555_s28, %s1555_s28 }
 0x576   :  { %v336_v20 = vpack.c.bf16 %v335_v19, %v335_v19 }
 0x577   :  { %p1562_p3 = por %p1561_p2, %p1560_p1 }
 0x578   :  { %1389 = vmatmul.mubr.msk.bf16.vlgmr.msra.gmra.mxu1 %vm162_vm2, %v336_v20 }
 0x579   :  { %1393 = vmatpush3.bf16.xpose.msra.mxu1 %v394_v21  ;;  %1394 = vmatprep.mubr.msk.bf16.mxu1 %vm1578_vm1, %v1577_v0  ;;  %p1563_p4 = pnand %p1562_p3, %p1556_p0 }
 0x57a   :  { %1398 = vmatprep.subr.bf16.mxu1 %v1577_v0 }
 0x580   :  { %1395 = vmatmul.mubr.msk.bf16.vlgmr.msra.gmra.mxu1 %vm162_vm2, %v387_v15 }
 0x581   :  { %1400 = vmatprep.mubr.msk.bf16.mxu1 %vm1578_vm1, %v1577_v0 }
 0x632   :  { %v543_v22 = vpop.f32.mrf.mxu0 }
 0x633   :  { %v549_v23 = vmul.f32 0.35355338, %v543_v22 }
 0x634   :  { %v1408_v24 = vpop.f32.mrf.mxu0 }
 0x635   :  { %v550_v25 = vadd.f32 %v549_v23, %v1706_v30  ;;  %v272_v24 = vpack.c.bf16 %v1727_v51, %v1727_v51  ;;  %v684_v51 = vld [vmem:[#allocation2] sm:$0xff] }
 0x636   :  { %v546_v26 = vpop.f32.mrf.mxu0 }
 0x637   :  { %v551_v27 = vsel %vm162_vm2, %v550_v25, -inf }
 0x638   :  { %v379_v28 = vpop.f32.mrf.mxu1  ;;  %552 = vmax.xlane.f32.xlu1 %v551_v27  ;;  %v1409_v29 = vpop.f32.mrf.mxu0 }
 0x639   :  { %v385_v52 = vpack.c.bf16 %v379_v28, %v379_v28 }
 0x63a   :  { %v1390_v31 = vpop.f32.mrf.mxu1 }
 0x63c   :  { %v382_v32 = vpop.f32.mrf.mxu1 }
 0x63e   :  { %v1391_v33 = vpop.f32.mrf.mxu1 }
 0x640   :  { %v430_v34 = vpop.f32.mrf.mxu1 }
 0x641   :  { %v436_v35 = vmul.f32 0.35355338, %v430_v34 }
 0x642   :  { %v1396_v36 = vpop.f32.mrf.mxu1 }
 0x643   :  { %v437_v37 = vadd.f32 %v436_v35, %v1706_v30 }
 0x644   :  { %v433_v38 = vpop.f32.mrf.mxu1 }
 0x645   :  { %v438_v39 = vsel %vm162_vm2, %v437_v37, -inf }
 0x646   :  { %439 = vmax.xlane.f32.xlu0 %v438_v39  ;;  %v1397_v40 = vpop.f32.mrf.mxu1 }
 0x649   :  { %563 = vrot.lane.b32.xlu1 %v1692_v18, %s1589_s16 }
 0x6c1   :  { %v553_v41 = vpop.xlane.xlu1 %552 }
 0x6c2   :  { %v554_v42 = vsub.f32 %v550_v25, %v553_v41 }
 0x6c4   :  { %v555_v43 = vmul.f32 1.442695, %v554_v42 }
 0x6c5   :  { %v564_v59 = vpop.permute.xlu1 %563 }
 0x6c6   :  { %1531 = vpow2.f32 %v555_v43 }
 0x6cf   :  { %v440_v44 = vpop.xlane.xlu0 %439 }
 0x6d0   :  { %v441_v45 = vsub.f32 %v437_v37, %v440_v44 }
 0x6d2   :  { %v442_v46 = vmul.f32 1.442695, %v441_v45 }
 0x6d3   :  { %v1532_v47 = vpop.eup %1531 }
 0x6d4   :  { %1533 = vpow2.f32 %v442_v46  ;;  %v557_v48 = vsel %vm162_vm2, %v1532_v47, 0.0 }
 0x6d5   :  { %558 = vadd.xlane.f32.xlu0 %v557_v48 }
 0x6e1   :  { %v1534_v49 = vpop.eup %1533 }
 0x6e2   :  { %v444_v50 = vsel %vm162_vm2, %v1534_v49, 0.0 }
 0x6e3   :  { %445 = vadd.xlane.f32.xlu0 %v444_v50 }
 0x6f9   :  { %450 = vrot.lane.b32.xlu0 %v1692_v18, %s1590_s17  ;;  %v569_v18 = vsel %vm228_vm3, %v564_v59, 0 }
 0x6fd   :  { %613 = vrot.lane.b32.xlu0 %v385_v52, %s1591_s18 }
 0x75e   :  { %v559_v53 = vpop.xlane.xlu0 %558 }
 0x76c   :  { %v446_v54 = vpop.xlane.xlu0 %445 }
 0x76d   :  { %1535 = vrcp.f32 %v446_v54 }
 0x76e   :  { %1537 = vrcp.f32 %v559_v53 }
 0x770   :  { %v451_v55 = vpop.permute.xlu0 %450 }
 0x771   :  { %v456_v56 = vsel %vm228_vm3, %v451_v55, 0 }
 0x772   :  { %1399 = vmatpush3.bf16.msra.mxu1 %v456_v56 }
 0x773   :  { %1410 = vmatprep.subr.bf16.mxu1 %v1577_v0 }
 0x774   :  { %v614_v23 = vpop.permute.xlu0 %613 }
 0x77a   :  { %v1536_v57 = vpop.eup %1535 }
 0x77b   :  { %v448_v58 = vmul.f32 %v1536_v57, %v1534_v49  ;;  %v1538_v61 = vpop.eup %1537 }
 0x77c   :  { %v561_v62 = vmul.f32 %v1538_v61, %v1532_v47 }
 0x77d   :  { %v449_v60 = vpack.c.bf16 %v448_v58, %v448_v58 }
 0x77e   :  { %v562_v63 = vpack.c.bf16 %v561_v62, %v561_v62 }
 0x77f   :  { %1401 = vmatmul.mubr.msk.bf16.vlgmr.msra.gmra.mxu1 %vm162_vm2, %v449_v60 }
 0x780   :  { %1411 = vmatpush3.bf16.msra.mxu1 %v569_v18  ;;  %1412 = vmatprep.mubr.msk.bf16.mxu1 %vm1578_vm1, %v1577_v0 }
 0x781   :  { %1424 = vmatprep.subr.bf16.mxu1 %v1577_v0 }
 0x787   :  { %1413 = vmatmul.mubr.msk.bf16.vlgmr.msra.gmra.mxu1 %vm162_vm2, %v562_v63 }
 0x788   :  { %1425 = vmatpush3.bf16.xpose.msra.mxu1 %v1636_v2  ;;  %1436 = vmatprep.mubr.msk.bf16.mxu1 %vm1578_vm1, %v1577_v0  ;;  %v1289_v2 = vld [vmem:[%s1918_s0 + $0x4] sm:$0xf]  ;;  %s1592_s0 = smov 16  }
 0x789   :  { %1426 = vmatprep.subr.bf16.mxu1 %v1577_v0 }
 0x790   :  { %1427 = vmatpush3.bf16.xpose.msra.mxu1 %v1644_v4  ;;  %v1795_v4 = vld [vmem:[%s1921_s3 + $0x8] sm:$0xff]  }
 0x791   :  { %1428 = vmatprep.subr.bf16.mxu1 %v1577_v0  ;;  %1417 = vmatpush3.bf16.msra.mxu0 %v1795_v4 }
 0x792   :  { %1418 = vmatprep.subr.bf16.mxu0 %v1577_v0 }
 0x798   :  { %1429 = vmatpush3.bf16.xpose.msra.mxu1 %v1652_v6  ;;  %v1801_v6 = vld [vmem:[%s1921_s3] sm:$0xff]  }
 0x799   :  { %1430 = vmatprep.subr.bf16.mxu1 %v1577_v0  ;;  %1419 = vmatpush3.bf16.msra.mxu0 %v1801_v6 }
 0x79a   :  { %1440 = vmatprep.subr.bf16.mxu0 %v1577_v0 }
 0x7a0   :  { %1431 = vmatpush3.bf16.xpose.msra.mxu1 %v1660_v8 }
 0x7a1   :  { %1432 = vmatprep.subr.bf16.mxu1 %v1577_v0 }
 0x7a8   :  { %1433 = vmatpush3.bf16.xpose.msra.mxu1 %v1668_v10 }
 0x7a9   :  { %1434 = vmatprep.subr.bf16.mxu1 %v1577_v0 }
 0x7b0   :  { %1435 = vmatpush3.bf16.xpose.msra.mxu1 %v1676_v12 }
 0x7b1   :  { %1476 = vmatprep.subr.bf16.mxu1 %v1577_v0 }
 0x7b7   :  { %1437 = vmatmul.mubr.msk.bf16.vlgmr.msra.gmra.mxu1 %vm33_vm0, %v1289_v2 }
 0x7b8   :  { %1478 = vmatprep.mubr.msk.bf16.mxu1 %vm1578_vm1, %v1577_v0 }
 0x83f   :  { %v492_v8 = vpop.f32.mrf.mxu1 }
 0x840   :  { %v498_v10 = vpack.c.bf16 %v492_v8, %v492_v8 }
 0x841   :  { %v1402_v12 = vpop.f32.mrf.mxu1 }
 0x842   :  { %616 = vrot.lane.b32.xlu1 %v498_v10, %s1592_s0 }
 0x843   :  { %v495_v1 = vpop.f32.mrf.mxu1 }
 0x845   :  { %v1403_v3 = vpop.f32.mrf.mxu1 }
 0x847   :  { %v605_v5 = vpop.f32.mrf.mxu1 }
 0x848   :  { %v611_v7 = vpack.c.bf16 %v605_v5, %v605_v5 }
 0x849   :  { %v1414_v9 = vpop.f32.mrf.mxu1 }
 0x84a   :  { %619 = vrot.lane.b32.xlu0 %v611_v7, %s1593_s25 }
 0x84b   :  { %v608_v11 = vpop.f32.mrf.mxu1 }
 0x84d   :  { %v1415_v13 = vpop.f32.mrf.mxu1 }
 0x877   :  { %v726_v15 = vpop.f32.mrf.mxu1 }
 0x878   :  { %v727_v17 = vadd.f32 %v1689_v14, %v726_v15  ;;  %v623_v14 = vsel %vm162_vm2, %v272_v24, %v614_v23 }
 0x879   :  { %v1438_v19 = vpop.f32.mrf.mxu1 }
 0x87a   :  { %v1814_v20 = vpack.c.bf16 %v727_v17, %v727_v17 }
 0x87b   :  { %v729_v21 = vpop.f32.mrf.mxu1 }
 0x87c   :  { %734 = vrot.lane.b32.xlu1 %v1814_v20, %s1580_s9 }
 0x87d   :  { %v1439_v22 = vpop.f32.mrf.mxu1 }
 0x8b4   :  { %v617_v25 = vpop.permute.xlu1 %616 }
 0x8b5   :  { %v626_v26 = vsel %vm624_vm5, %v623_v14, %v617_v25 }
 0x8bc   :  { %v620_v27 = vpop.permute.xlu0 %619 }
 0x8bd   :  { %v629_v28 = vsel %vm627_vm6, %v626_v26, %v620_v27 }
 0x8be   :  { %1421 = vmatmul.mubr.msk.bf16.vlgmr.msra.gmra.mxu0 %vm33_vm0, %v629_v28 }
 0x8bf   :  { %1442 = vmatprep.mubr.msk.bf16.mxu0 %vm1578_vm1, %v1577_v0 }
 0x8ee   :  { %v735_v29 = vpop.permute.xlu1 %734 }
 0x8ef   :  { %v740_v31 = vsel %vm162_vm2, %v735_v29, 0 }
 0x8f0   :  { %1441 = vmatpush3.bf16.xpose.msra.mxu0 %v740_v31 }
 0x8f1   :  { %1446 = vmatprep.subr.bf16.mxu0 %v1577_v0 }
 0x8f7   :  { %1443 = vmatmul.mubr.msk.bf16.vlgmr.msra.gmra.mxu0 %vm162_vm2, %v1814_v20 }
 0x8f8   :  { %1448 = vmatprep.mubr.msk.bf16.mxu0 %vm1578_vm1, %v1577_v0 }
 0x97e   :  { %v678_v32 = vpop.f32.mrf.mxu0 }
 0x97f   :  { %v685_v33 = vadd.f32 %v684_v51, %v678_v32 }
 0x980   :  { %v1422_v34 = vpop.f32.mrf.mxu0 }
 0x981   :  { %686 = vst.msk [vmem:[#allocation2] sm:$0xff] %vm33_vm0, %v685_v33 }
 0x982   :  { %v681_v35 = vpop.f32.mrf.mxu0 }
 0x984   :  { %v1423_v36 = vpop.f32.mrf.mxu0 }
 0x988   :  { %v1249_v37 = vld [vmem:[#allocation2] sm:$0xff] }
 0x989   :  { %1251 = vst.msk [vmem:[#allocation3] sm:$0xff] %vm33_vm0, %v1249_v37 }
 0x9b7   :  { %v776_v38 = vpop.f32.mrf.mxu0 }
 0x9b8   :  { %v782_v39 = vmul.f32 0.35355338, %v776_v38 }
 0x9b9   :  { %v1444_v40 = vpop.f32.mrf.mxu0 }
 0x9ba   :  { %v783_v41 = vadd.f32 %v782_v39, %v1706_v30 }
 0x9bb   :  { %v779_v42 = vpop.f32.mrf.mxu0 }
 0x9bc   :  { %v784_v43 = vsel %vm162_vm2, %v783_v41, -inf }
 0x9bd   :  { %785 = vmax.xlane.f32.xlu0 %v784_v43  ;;  %v1445_v44 = vpop.f32.mrf.mxu0 }
 0x9d3   :  { %796 = vrot.lane.b32.xlu0 %v1814_v20, %s1579_s1 }
 0x9d7   :  { %845 = vrot.lane.b32.xlu0 %v1814_v20, %s1584_s11 }
 0xa46   :  { %v786_v45 = vpop.xlane.xlu0 %785 }
 0xa47   :  { %v787_v46 = vsub.f32 %v783_v41, %v786_v45 }
 0xa49   :  { %v788_v47 = vmul.f32 1.442695, %v787_v46 }
 0xa4a   :  { %v797_v48 = vpop.permute.xlu0 %796 }
 0xa4b   :  { %1539 = vpow2.f32 %v788_v47  ;;  %v802_v49 = vsel %vm228_vm3, %v797_v48, 0 }
 0xa4c   :  { %1447 = vmatpush3.bf16.msra.mxu0 %v802_v49 }
 0xa4d   :  { %1452 = vmatprep.subr.bf16.mxu0 %v1577_v0 }
 0xa4e   :  { %v846_v59 = vpop.permute.xlu0 %845 }
 0xa58   :  { %v1540_v50 = vpop.eup %1539 }
 0xa59   :  { %v790_v52 = vsel %vm162_vm2, %v1540_v50, 0.0 }
 0xa5a   :  { %791 = vadd.xlane.f32.xlu1 %v790_v52 }
 0xa6b   :  { %847 = vrot.lane.b32.xlu1 %v1814_v20, %s1583_s10 }
 0xae3   :  { %v792_v53 = vpop.xlane.xlu1 %791 }
 0xae4   :  { %1541 = vrcp.f32 %v792_v53 }
 0xae7   :  { %v848_v56 = vpop.permute.xlu1 %847 }
 0xae8   :  { %v853_v58 = vsel %vm162_vm2, %v848_v56, 0 }
 0xaf1   :  { %v1542_v54 = vpop.eup %1541 }
 0xaf2   :  { %v794_v55 = vmul.f32 %v1542_v54, %v1540_v50 }
 0xaf4   :  { %v795_v57 = vpack.c.bf16 %v794_v55, %v794_v55 }
 0xaf6   :  { %1449 = vmatmul.mubr.msk.bf16.vlgmr.msra.gmra.mxu0 %vm162_vm2, %v795_v57 }
 0xaf7   :  { %1453 = vmatpush3.bf16.xpose.msra.mxu0 %v853_v58  ;;  %1454 = vmatprep.mubr.msk.bf16.mxu0 %vm1578_vm1, %v1577_v0 }
 0xaf8   :  { %1458 = vmatprep.subr.bf16.mxu0 %v1577_v0 }
 0xafe   :  { %1455 = vmatmul.mubr.msk.bf16.vlgmr.msra.gmra.mxu0 %vm162_vm2, %v846_v59 }
 0xaff   :  { %1460 = vmatprep.mubr.msk.bf16.mxu0 %vm1578_vm1, %v1577_v0 }
 0xbb6   :  { %v1853_v60 = vpop.f32.mrf.mxu0 }
 0xbb8   :  { %v1450_v61 = vpop.f32.mrf.mxu0 }
 0xbba   :  { %v841_v18 = vpop.f32.mrf.mxu0 }
 0xbbc   :  { %v1451_v62 = vpop.f32.mrf.mxu0 }
 0xbbe   :  { %v889_v63 = vpop.f32.mrf.mxu0 }
 0xbbf   :  { %v895_v2 = vmul.f32 0.35355338, %v889_v63 }
 0xbc0   :  { %v1456_v8 = vpop.f32.mrf.mxu0 }
 0xbc1   :  { %v896_v10 = vadd.f32 %v895_v2, %v1706_v30 }
 0xbc2   :  { %v892_v12 = vpop.f32.mrf.mxu0 }
 0xbc3   :  { %v897_v1 = vsel %vm162_vm2, %v896_v10, -inf }
 0xbc4   :  { %898 = vmax.xlane.f32.xlu1 %v897_v1  ;;  %v1457_v3 = vpop.f32.mrf.mxu0 }
 0xbd5   :  { %960 = vrot.lane.b32.xlu1 %v1814_v20, %s1586_s13 }
 0xbd9   :  { %958 = vrot.lane.b32.xlu1 %v1814_v20, %s1587_s14 }
 0xbdd   :  { %1071 = vrot.lane.b32.xlu1 %v1814_v20, %s1588_s15 }
 0xc4d   :  { %v899_v5 = vpop.xlane.xlu1 %898 }
 0xc4e   :  { %v900_v7 = vsub.f32 %v896_v10, %v899_v5 }
 0xc50   :  { %v901_v9 = vmul.f32 1.442695, %v900_v7 }
 0xc51   :  { %v961_v16 = vpop.permute.xlu1 %960 }
 0xc52   :  { %1543 = vpow2.f32 %v901_v9  ;;  %v966_v27 = vsel %vm162_vm2, %v961_v16, 0 }
 0xc55   :  { %v959_v23 = vpop.permute.xlu1 %958 }
 0xc59   :  { %v1072_v14 = vpop.permute.xlu1 %1071 }
 0xc5f   :  { %v1544_v11 = vpop.eup %1543 }
 0xc60   :  { %v903_v13 = vsel %vm162_vm2, %v1544_v11, 0.0 }
 0xc61   :  { %904 = vadd.xlane.f32.xlu0 %v903_v13 }
 0xc77   :  { %909 = vrot.lane.b32.xlu0 %v1814_v20, %s1582_s2 }
 0xc7b   :  { %1073 = vrot.lane.b32.xlu0 %v1814_v20, %s1585_s12 }
 0xcea   :  { %v905_v15 = vpop.xlane.xlu0 %904 }
 0xceb   :  { %1545 = vrcp.f32 %v905_v15 }
 0xcee   :  { %v910_v17 = vpop.permute.xlu0 %909 }
 0xcef   :  { %v915_v19 = vsel %vm228_vm3, %v910_v17, 0 }
 0xcf0   :  { %1459 = vmatpush3.bf16.msra.mxu0 %v915_v19 }
 0xcf1   :  { %1464 = vmatprep.subr.bf16.mxu0 %v1577_v0 }
 0xcf2   :  { %v1074_v21 = vpop.permute.xlu0 %1073 }
 0xcf3   :  { %v1079_v22 = vsel %vm162_vm2, %v1074_v21, 0 }
 0xcf4   :  { %1477 = vmatpush3.bf16.xpose.msra.mxu1 %v1079_v22 }
 0xcf5   :  { %1488 = vmatprep.subr.bf16.mxu1 %v1577_v0 }
 0xcf8   :  { %v1546_v24 = vpop.eup %1545 }
 0xcf9   :  { %v907_v25 = vmul.f32 %v1546_v24, %v1544_v11  ;;  %v1243_v24 = vld [vmem:[#allocation2 + $0x8] sm:$0xff] }
 0xcfb   :  { %1479 = vmatmul.mubr.msk.bf16.vlgmr.msra.gmra.mxu1 %vm162_vm2, %v1072_v14  ;;  %v908_v26 = vpack.c.bf16 %v907_v25, %v907_v25 }
 0xcfc   :  { %1489 = vmatpush3.bf16.msra.mxu1 %v1795_v4  ;;  %1492 = vmatprep.mubr.msk.bf16.mxu1 %vm1578_vm1, %v1577_v0 }
 0xcfd   :  { %1461 = vmatmul.mubr.msk.bf16.vlgmr.msra.gmra.mxu0 %vm162_vm2, %v908_v26  ;;  %1490 = vmatprep.subr.bf16.mxu1 %v1577_v0 }
 0xcfe   :  { %1465 = vmatpush3.bf16.xpose.msra.mxu0 %v966_v27  ;;  %1466 = vmatprep.mubr.msk.bf16.mxu0 %vm1578_vm1, %v1577_v0 }
 0xcff   :  { %1470 = vmatprep.subr.bf16.mxu0 %v1577_v0 }
 0xd00   :  { %1491 = vmatpush3.bf16.msra.mxu1 %v1801_v6 }
 0xd05   :  { %1467 = vmatmul.mubr.msk.bf16.vlgmr.msra.gmra.mxu0 %vm162_vm2, %v959_v23 }
 0xd06   :  { %1472 = vmatprep.mubr.msk.bf16.mxu0 %vm1578_vm1, %v1577_v0 }
 0xdbb   :  { %v1115_v4 = vpop.f32.mrf.mxu1 }
 0xdbc   :  { %v1121_v28 = vmul.f32 0.35355338, %v1115_v4 }
 0xdbd   :  { %v951_v29 = vpop.f32.mrf.mxu0  ;;  %v1480_v31 = vpop.f32.mrf.mxu1 }
 0xdbe   :  { %v1122_v51 = vadd.f32 %v1121_v28, %v1706_v30  ;;  %v957_v44 = vpack.c.bf16 %v951_v29, %v951_v29 }
 0xdbf   :  { %v1462_v32 = vpop.f32.mrf.mxu0  ;;  %v1118_v33 = vpop.f32.mrf.mxu1 }
 0xdc0   :  { %v1123_v34 = vsel %vm162_vm2, %v1122_v51, -inf }
 0xdc1   :  { %1124 = vmax.xlane.f32.xlu1 %v1123_v34  ;;  %v954_v35 = vpop.f32.mrf.mxu0  ;;  %v1481_v36 = vpop.f32.mrf.mxu1 }
 0xdc3   :  { %v1463_v37 = vpop.f32.mrf.mxu0 }
 0xdc5   :  { %v1002_v6 = vpop.f32.mrf.mxu0 }
 0xdc6   :  { %v1008_v38 = vmul.f32 0.35355338, %v1002_v6 }
 0xdc7   :  { %v1468_v39 = vpop.f32.mrf.mxu0 }
 0xdc8   :  { %v1009_v40 = vadd.f32 %v1008_v38, %v1706_v30 }
 0xdc9   :  { %v1005_v41 = vpop.f32.mrf.mxu0 }
 0xdca   :  { %v1010_v42 = vsel %vm162_vm2, %v1009_v40, -inf }
 0xdcb   :  { %1011 = vmax.xlane.f32.xlu0 %v1010_v42  ;;  %v1469_v43 = vpop.f32.mrf.mxu0 }
 0xdd2   :  { %1022 = vrot.lane.b32.xlu1 %v1814_v20, %s1590_s17 }
 0xdd6   :  { %1185 = vrot.lane.b32.xlu1 %v957_v44, %s1591_s18 }
 0xe4a   :  { %v1125_v45 = vpop.xlane.xlu1 %1124 }
 0xe4b   :  { %v1126_v48 = vsub.f32 %v1122_v51, %v1125_v45 }
 0xe4d   :  { %v1127_v50 = vmul.f32 1.442695, %v1126_v48 }
 0xe4e   :  { %v1023_v46 = vpop.permute.xlu1 %1022 }
 0xe4f   :  { %v1028_v47 = vsel %vm228_vm3, %v1023_v46, 0 }
 0xe50   :  { %1471 = vmatpush3.bf16.msra.mxu0 %v1028_v47 }
 0xe51   :  { %1482 = vmatprep.subr.bf16.mxu0 %v1577_v0 }
 0xe52   :  { %v1186_v16 = vpop.permute.xlu1 %1185 }
 0xe54   :  { %v1012_v30 = vpop.xlane.xlu0 %1011 }
 0xe55   :  { %v1013_v49 = vsub.f32 %v1009_v40, %v1012_v30 }
 0xe57   :  { %v1014_v52 = vmul.f32 1.442695, %v1013_v49 }
 0xe59   :  { %1547 = vpow2.f32 %v1014_v52 }
 0xe5a   :  { %1549 = vpow2.f32 %v1127_v50 }
 0xe66   :  { %v1548_v53 = vpop.eup %1547 }
 0xe67   :  { %v1016_v54 = vsel %vm162_vm2, %v1548_v53, 0.0  ;;  %v1550_v55 = vpop.eup %1549 }
 0xe68   :  { %1017 = vadd.xlane.f32.xlu0 %v1016_v54  ;;  %v1129_v56 = vsel %vm162_vm2, %v1550_v55, 0.0 }
 0xe6c   :  { %1130 = vadd.xlane.f32.xlu0 %v1129_v56 }
 0xe82   :  { %1135 = vrot.lane.b32.xlu0 %v1814_v20, %s1589_s16 }
 0xef1   :  { %v1018_v57 = vpop.xlane.xlu0 %1017 }
 0xef2   :  { %1551 = vrcp.f32 %v1018_v57 }
 0xef5   :  { %v1131_v58 = vpop.xlane.xlu0 %1130 }
 0xef6   :  { %1553 = vrcp.f32 %v1131_v58 }
 0xef9   :  { %v1136_v18 = vpop.permute.xlu0 %1135 }
 0xefa   :  { %v1141_v2 = vsel %vm228_vm3, %v1136_v18, 0 }
 0xeff   :  { %v1552_v59 = vpop.eup %1551 }
 0xf00   :  { %v1020_v61 = vmul.f32 %v1552_v59, %v1548_v53 }
 0xf02   :  { %v1021_v62 = vpack.c.bf16 %v1020_v61, %v1020_v61 }
 0xf03   :  { %v1554_v63 = vpop.eup %1553 }
 0xf04   :  { %1473 = vmatmul.mubr.msk.bf16.vlgmr.msra.gmra.mxu0 %vm162_vm2, %v1021_v62  ;;  %v1133_v8 = vmul.f32 %v1554_v63, %v1550_v55 }
 0xf05   :  { %1483 = vmatpush3.bf16.msra.mxu0 %v1141_v2  ;;  %1484 = vmatprep.mubr.msk.bf16.mxu0 %vm1578_vm1, %v1577_v0  ;;  %v844_v0 = vpack.c.bf16 %v1853_v60, %v1853_v60 }
 0xf06   :  { %v1134_v10 = vpack.c.bf16 %v1133_v8, %v1133_v8 }
 0xf07   :  { %v1195_v19 = vsel %vm162_vm2, %v844_v0, %v1186_v16 }
 0xf0c   :  { %1485 = vmatmul.mubr.msk.bf16.vlgmr.msra.gmra.mxu0 %vm162_vm2, %v1134_v10 }
 0xfc4   :  { %v1064_v20 = vpop.f32.mrf.mxu0 }
 0xfc5   :  { %v1070_v12 = vpack.c.bf16 %v1064_v20, %v1064_v20 }
 0xfc6   :  { %v1474_v1 = vpop.f32.mrf.mxu0 }
 0xfc7   :  { %1188 = vrot.lane.b32.xlu1 %v1070_v12, %s1592_s0 }
 0xfc8   :  { %v1067_v3 = vpop.f32.mrf.mxu0 }
 0xfca   :  { %v1475_v5 = vpop.f32.mrf.mxu0 }
 0xfcc   :  { %v1177_v7 = vpop.f32.mrf.mxu0 }
 0xfcd   :  { %v1183_v9 = vpack.c.bf16 %v1177_v7, %v1177_v7 }
 0xfce   :  { %v1486_v11 = vpop.f32.mrf.mxu0 }
 0xfcf   :  { %1191 = vrot.lane.b32.xlu0 %v1183_v9, %s1593_s25 }
 0xfd0   :  { %v1180_v13 = vpop.f32.mrf.mxu0 }
 0xfd2   :  { %v1487_v15 = vpop.f32.mrf.mxu0 }
0x1039   :  { %v1189_v17 = vpop.permute.xlu1 %1188 }
0x103a   :  { %v1197_v21 = vsel %vm624_vm5, %v1195_v19, %v1189_v17 }
0x1041   :  { %v1192_v22 = vpop.permute.xlu0 %1191 }
0x1042   :  { %v1199_v23 = vsel %vm627_vm6, %v1197_v21, %v1192_v22 }
0x1043   :  { %1493 = vmatmul.mubr.msk.bf16.vlgmr.msra.gmra.mxu1 %vm33_vm0, %v1199_v23 }
0x1103   :  { %v1236_v25 = vpop.f32.mrf.mxu1 }
0x1104   :  { %v1244_v14 = vadd.f32 %v1243_v24, %v1236_v25 }
0x1105   :  { %v1494_v26 = vpop.f32.mrf.mxu1 }
0x1106   :  { %1245 = vst.msk [vmem:[#allocation2 + $0x8] sm:$0xff] %vm33_vm0, %v1244_v14 }
0x1107   :  { %v1239_v27 = vpop.f32.mrf.mxu1 }
0x1109   :  { %v1495_v4 = vpop.f32.mrf.mxu1 }
0x110d   :  { %v1250_v60 = vld [vmem:[#allocation2 + $0x8] sm:$0xff] }
0x110e   :  { %1252 = vst.msk [vmem:[#allocation3 + $0x8] sm:$0xff] %vm33_vm0, %v1250_v60 }
0x110f   :  { %1566 = shalt.err (!%p1563_p4)
}
0x1110   :  { %s1595_s29 = smov 128  }
0x1111   :  { %1264 = dma.vmem_to_hbm [thread:$0]  %s1259_s27, 256, %s1923_s5, [#allocation4], %s1595_s29, %s1595_s29, %s1591_s18  }
0x1112   :  { %1575 = dma.done.wait [#allocation4], 256  }
0x1113   :  { %1576 = vsyncadd [#allocation4], 4294967040 }
0x1114   :  { %1268 = vsyncpa [#allocation4], 1 }

</bundles_post_ra>
